<compile_context>
chip_gen: v7x
topology: tpu7x:2x2x1
jax: 0.10.0
libtpu: 0.0.40
codegen_flags: <defaults>
</compile_context>

<pallas_src>
from functools import partial

import jax
import jax.numpy as jnp
from jax.experimental import pallas as pl
from jax.experimental.pallas import tpu as pltpu


def _round_up(v, m):
    return (v + m - 1) // m * m


def _decoder_block_kernel(H, W, b1_off, b2_off, b3_off,
                          x_ref, w1_ref, w2s_ref, w3_ref, b_ref, out_ref):
    HW = H * W
    cmid = w1_ref.shape[0]
    cout4 = w3_ref.shape[0]

    b1 = b_ref[b1_off:b1_off + cmid]             # (Cmid, 1)
    b2 = b_ref[b2_off:b2_off + 4 * cmid]         # (4*Cmid, 1)
    b3 = b_ref[b3_off:b3_off + cout4]            # (4*Cout, 1)

    x = x_ref[0]                                 # (Cin, HW)

    # ---- conv1 (1x1) + folded BN1 + ReLU ------------------------------------
    a = jnp.dot(w1_ref[...], x, preferred_element_type=jnp.float32)
    a = jnp.maximum(a + b1, 0.0)                 # (Cmid, HW)

    # ---- zero-padded spatial shifts of `a` (lane axis = flattened H*W) ------
    lane = jax.lax.broadcasted_iota(jnp.int32, (1, HW), 1)
    col_ok = (lane % W) != (W - 1)               # not the last image column
    row_ok = lane < (HW - W)                     # not the last image row
    both_ok = jnp.logical_and(col_ok, row_ok)

    a_w = jnp.where(col_ok, pltpu.roll(a, shift=HW - 1, axis=1), 0.0)        # a[:, i+1]
    a_h = jnp.where(row_ok, pltpu.roll(a, shift=HW - W, axis=1), 0.0)        # a[:, i+W]
    a_hw = jnp.where(both_ok, pltpu.roll(a, shift=HW - W - 1, axis=1), 0.0)  # a[:, i+W+1]

    # ---- ConvTranspose2d(3x3, s=2, p=1, op=1) + folded BN2 + ReLU -----------
    # 4 packed matmuls (one per shifted copy of `a`); result row-blocks are the
    # 4 output-pixel parities (ee, eo, oe, oo), channels on sublanes.
    p = jnp.dot(w2s_ref[0], a, preferred_element_type=jnp.float32)
    p = p + jnp.dot(w2s_ref[1], a_w, preferred_element_type=jnp.float32)
    p = p + jnp.dot(w2s_ref[2], a_h, preferred_element_type=jnp.float32)
    p = p + jnp.dot(w2s_ref[3], a_hw, preferred_element_type=jnp.float32)
    p = jnp.maximum(p + b2, 0.0)                 # (4*Cmid, HW)

    # ---- conv3 (1x1, block-diagonal over the 4 parities) + BN3 + ReLU -------
    z = jnp.dot(w3_ref[...], p, preferred_element_type=jnp.float32)
    out_ref[0] = jnp.maximum(z + b3, 0.0)        # (4*Cout, HW) lane-dense store


def decoder_block_forward(x_nchw, params):
    N, Cin, H, W = x_nchw.shape
    Cmid = params["w1"].shape[1]
    Cout = params["w3"].shape[1]
    HW = H * W

    # channels-on-sublane / spatial-on-lane: pure reshape of NCHW.
    x = x_nchw.reshape(N, Cin, HW)

    # ---- fold eval-mode BN into weights/biases (trace time) -----------------
    s1, t1 = params["s1"], params["t1"]
    s2, t2 = params["s2"], params["t2"]
    s3, t3 = params["s3"], params["t3"]

    w1t = (params["w1"] * s1).T                              # (Cmid, Cin)
    b1c = (params["b1"] * s1 + t1).reshape(Cmid, 1)

    w2f = params["w2"] * s2.reshape(1, 1, 1, Cmid)           # (3,3,Cmid,Cmid)
    b2c = (params["b2"] * s2 + t2).reshape(Cmid, 1)

    w3t = (params["w3"] * s3).T                              # (Cout, Cmid)
    b3c = (params["b3"] * s3 + t3).reshape(Cout, 1)

    # ---- pack the 9 deconv taps into 4 per-shift weight matrices ------------
    # parity row blocks: p0=ee, p1=eo, p2=oe, p3=oo.
    W2t = lambda ky, kx: w2f[ky, kx].T                       # (Cout_mid, Cin_mid)
    Z = jnp.zeros((Cmid, Cmid), jnp.float32)
    w_s0 = jnp.concatenate([W2t(1, 1), W2t(1, 2), W2t(2, 1), W2t(2, 2)], axis=0)
    w_sw = jnp.concatenate([Z,         W2t(1, 0), Z,         W2t(2, 0)], axis=0)
    w_sh = jnp.concatenate([Z,         Z,         W2t(0, 1), W2t(0, 2)], axis=0)
    w_shw = jnp.concatenate([Z,        Z,         Z,         W2t(0, 0)], axis=0)
    w2s = jnp.stack([w_s0, w_sw, w_sh, w_shw], axis=0)       # (4, 4*Cmid, Cmid)

    # block-diagonal conv3 applied to all 4 parity blocks at once
    w3big = jnp.kron(jnp.eye(4, dtype=jnp.float32), w3t)     # (4*Cout, 4*Cmid)

    # ---- pack the three folded biases into one sublane-aligned array --------
    b1_off = 0
    b2_off = _round_up(Cmid, 8)
    b3_off = b2_off + _round_up(4 * Cmid, 8)
    tot = _round_up(b3_off + 4 * Cout, 8)
    bpack = jnp.zeros((tot, 1), jnp.float32)
    bpack = bpack.at[b1_off:b1_off + Cmid].set(b1c)
    bpack = bpack.at[b2_off:b2_off + 4 * Cmid].set(jnp.tile(b2c, (4, 1)))
    bpack = bpack.at[b3_off:b3_off + 4 * Cout].set(jnp.tile(b3c, (4, 1)))

    out_k = pl.pallas_call(
        partial(_decoder_block_kernel, H, W, b1_off, b2_off, b3_off),
        out_shape=jax.ShapeDtypeStruct((N, 4 * Cout, HW), jnp.float32),
        grid_spec=pltpu.PrefetchScalarGridSpec(
            num_scalar_prefetch=0,
            grid=(N,),
            in_specs=[
                pl.BlockSpec((1, Cin, HW), lambda n: (n, 0, 0)),
                pl.BlockSpec((Cmid, Cin), lambda n: (0, 0)),
                pl.BlockSpec((4, 4 * Cmid, Cmid), lambda n: (0, 0, 0)),
                pl.BlockSpec((4 * Cout, 4 * Cmid), lambda n: (0, 0)),
                pl.BlockSpec((tot, 1), lambda n: (0, 0)),
            ],
            out_specs=pl.BlockSpec((1, 4 * Cout, HW), lambda n: (n, 0, 0)),
        ),
        compiler_params=pltpu.CompilerParams(dimension_semantics=("parallel",)),
    )(x, w1t, w2s, w3big, bpack)

    # pixel-shuffle the 4 parity row-blocks back to (N, Cout, 2H, 2W)
    out = out_k.reshape(N, 2, 2, Cout, H, W)       # (n, ry, rx, c, h, w)
    out = jnp.transpose(out, (0, 3, 4, 1, 5, 2))   # (n, c, h, ry, w, rx)
    return out.reshape(N, Cout, 2 * H, 2 * W)


def _reference_forward(x_nchw, params):
    hp = jax.lax.Precision.HIGHEST
    x = jnp.transpose(x_nchw, (0, 2, 3, 1))        # NHWC
    h = jnp.einsum("nhwc,cd->nhwd", x, params["w1"], precision=hp)
    h = jnp.maximum((h + params["b1"]) * params["s1"] + params["t1"], 0.0)
    # transposed conv == lhs-dilated conv with spatially flipped kernel
    w2_flip = params["w2"][::-1, ::-1]
    h = jax.lax.conv_general_dilated(
        h, w2_flip, window_strides=(1, 1), padding=[(1, 2), (1, 2)],
        lhs_dilation=(2, 2), dimension_numbers=("NHWC", "HWIO", "NHWC"),
        precision=hp)
    h = jnp.maximum((h + params["b2"]) * params["s2"] + params["t2"], 0.0)
    h = jnp.einsum("nhwc,cd->nhwd", h, params["w3"], precision=hp)
    h = jnp.maximum((h + params["b3"]) * params["s3"] + params["t3"], 0.0)
    return jnp.transpose(h, (0, 3, 1, 2))


def _bn_fold(key, c):
    kg, kb, km, kv = jax.random.split(key, 4)
    gamma = 1.0 + 0.1 * jax.random.normal(kg, (c,), jnp.float32)
    beta = 0.1 * jax.random.normal(kb, (c,), jnp.float32)
    mean = 0.1 * jax.random.normal(km, (c,), jnp.float32)
    var = 1.0 + 0.2 * jax.random.uniform(kv, (c,), jnp.float32)
    scale = gamma / jnp.sqrt(var + 1e-5)
    shift = beta - mean * scale
    return scale.reshape(1, c), shift.reshape(1, c)


if __name__ == "__main__":
    N, Cin, H, W = 2, 16, 16, 16          # DecoderBlock(in_channels=16, n_filters=8)
    Cmid, Cout = Cin // 4, 8

    k = jax.random.split(jax.random.PRNGKey(0), 10)
    params = {
        "w1": 0.2 * jax.random.normal(k[0], (Cin, Cmid), jnp.float32),
        "b1": 0.1 * jax.random.normal(k[1], (1, Cmid), jnp.float32),
        "w2": 0.2 * jax.random.normal(k[2], (3, 3, Cmid, Cmid), jnp.float32),
        "b2": 0.1 * jax.random.normal(k[3], (1, Cmid), jnp.float32),
        "w3": 0.2 * jax.random.normal(k[4], (Cmid, Cout), jnp.float32),
        "b3": 0.1 * jax.random.normal(k[5], (1, Cout), jnp.float32),
    }
    params["s1"], params["t1"] = _bn_fold(k[6], Cmid)
    params["s2"], params["t2"] = _bn_fold(k[7], Cmid)
    params["s3"], params["t3"] = _bn_fold(k[8], Cout)

    x = jax.random.normal(k[9], (N, Cin, H, W), jnp.float32)

    out = decoder_block_forward(x, params)
    out = jax.block_until_ready(out)

    ref = _reference_forward(x, params)
    assert out.shape == (N, Cout, 2 * H, 2 * W), out.shape
    assert jnp.allclose(out, ref, atol=2e-3, rtol=2e-3), float(
        jnp.max(jnp.abs(out - ref)))
    print("KERNEL_OK")
</pallas_src>

<mosaic_0001>
module attributes {stable_mosaic.version = 11 : i64} {
  func.func @_decoder_block_kernel(%arg0: i32, %arg1: memref<1x16x256xf32, #tpu.memory_space<vmem>>, %arg2: memref<4x16xf32, #tpu.memory_space<vmem>>, %arg3: memref<4x16x4xf32, #tpu.memory_space<vmem>>, %arg4: memref<32x16xf32, #tpu.memory_space<vmem>>, %arg5: memref<56x1xf32, #tpu.memory_space<vmem>>, %arg6: memref<1x32x256xf32, #tpu.memory_space<vmem>>) attributes {dimension_semantics = [#tpu.dimension_semantics<parallel>], iteration_bounds = array<i64: 2>, scalar_prefetch = 0 : i64, scratch_operands = 0 : i64, tpu.core_type = #tpu.core_type<tc>, window_params = [{transform_indices = @transform_0, window_bounds = array<i64: 1, 16, 256>}, {pipeline_mode = #tpu.pipeline_mode<synchronous>, transform_indices = @transform_1, window_bounds = array<i64: 4, 16>}, {pipeline_mode = #tpu.pipeline_mode<synchronous>, transform_indices = @transform_2, window_bounds = array<i64: 4, 16, 4>}, {pipeline_mode = #tpu.pipeline_mode<synchronous>, transform_indices = @transform_3, window_bounds = array<i64: 32, 16>}, {pipeline_mode = #tpu.pipeline_mode<synchronous>, transform_indices = @transform_4, window_bounds = array<i64: 56, 1>}, {transform_indices = @transform_5, window_bounds = array<i64: 1, 32, 256>}]} {
    %c0 = arith.constant 0 : index
    %c0_0 = arith.constant 0 : index
    %0 = vector.load %arg5[%c0, %c0_0] : memref<56x1xf32, #tpu.memory_space<vmem>>, vector<4x1xf32>
    %c8 = arith.constant 8 : index
    %c0_1 = arith.constant 0 : index
    %1 = vector.load %arg5[%c8, %c0_1] : memref<56x1xf32, #tpu.memory_space<vmem>>, vector<16x1xf32>
    %c24 = arith.constant 24 : index
    %c0_2 = arith.constant 0 : index
    %2 = vector.load %arg5[%c24, %c0_2] : memref<56x1xf32, #tpu.memory_space<vmem>>, vector<32x1xf32>
    %c0_3 = arith.constant 0 : index
    %c0_4 = arith.constant 0 : index
    %c0_5 = arith.constant 0 : index
    %3 = vector.load %arg1[%c0_3, %c0_4, %c0_5] : memref<1x16x256xf32, #tpu.memory_space<vmem>>, vector<1x16x256xf32>
    %4 = vector.shape_cast %3 : vector<1x16x256xf32> to vector<16x256xf32>
    %c0_6 = arith.constant 0 : index
    %c0_7 = arith.constant 0 : index
    %5 = vector.load %arg2[%c0_6, %c0_7] : memref<4x16xf32, #tpu.memory_space<vmem>>, vector<4x16xf32>
    %cst = arith.constant dense<0.000000e+00> : vector<4x256xf32>
    %6 = tpu.matmul %5, %4, %cst {dimension_numbers = #tpu.dot_dimension_numbers<[1], [0], [0], [1], [0, 0, 1, 1], [], []>} : vector<4x16xf32>, vector<16x256xf32>, vector<4x256xf32> -> vector<4x256xf32>
    %7 = vector.broadcast %0 : vector<4x1xf32> to vector<4x256xf32>
    %8 = arith.addf %6, %7 : vector<4x256xf32>
    %cst_8 = arith.constant 0.000000e+00 : f32
    %9 = vector.broadcast %cst_8 : f32 to vector<4x256xf32>
    %10 = arith.maximumf %8, %9 : vector<4x256xf32>
    %11 = tpu.iota {dimensions = array<i32: 1>} : vector<1x256xi32>
    %c16_i32 = arith.constant 16 : i32
    %c0_i32 = arith.constant 0 : i32
    %12 = arith.cmpi eq, %c16_i32, %c0_i32 : i32
    %c1_i32 = arith.constant 1 : i32
    %13 = arith.select %12, %c1_i32, %c16_i32 : i32
    %14 = vector.broadcast %13 : i32 to vector<1x256xi32>
    %15 = arith.remsi %11, %14 : vector<1x256xi32>
    %c0_i32_9 = arith.constant 0 : i32
    %16 = vector.broadcast %c0_i32_9 : i32 to vector<1x256xi32>
    %17 = arith.cmpi ne, %15, %16 : vector<1x256xi32>
    %c0_i32_10 = arith.constant 0 : i32
    %18 = vector.broadcast %c0_i32_10 : i32 to vector<1x256xi32>
    %19 = arith.cmpi slt, %15, %18 : vector<1x256xi32>
    %c0_i32_11 = arith.constant 0 : i32
    %20 = arith.cmpi slt, %13, %c0_i32_11 : i32
    %21 = vector.broadcast %20 : i1 to vector<1x256xi1>
    %22 = vector.broadcast %21 : vector<1x256xi1> to vector<1x256xi1>
    %23 = arith.xori %19, %22 : vector<1x256xi1>
    %24 = arith.andi %23, %17 : vector<1x256xi1>
    %25 = vector.broadcast %13 : i32 to vector<1x256xi32>
    %26 = arith.addi %15, %25 : vector<1x256xi32>
    %27 = arith.select %24, %26, %15 : vector<1x256xi1>, vector<1x256xi32>
    %c15_i32 = arith.constant 15 : i32
    %28 = vector.broadcast %c15_i32 : i32 to vector<1x256xi32>
    %29 = arith.cmpi ne, %27, %28 : vector<1x256xi32>
    %c240_i32 = arith.constant 240 : i32
    %30 = vector.broadcast %c240_i32 : i32 to vector<1x256xi32>
    %31 = arith.cmpi slt, %11, %30 : vector<1x256xi32>
    %32 = arith.andi %29, %31 : vector<1x256xi1>
    %c255_i32 = arith.constant 255 : i32
    %33 = tpu.dynamic_rotate %10 by %c255_i32 dim 1 : vector<4x256xf32>, i32 -> vector<4x256xf32>
    %cst_12 = arith.constant 0.000000e+00 : f32
    %34 = vector.shape_cast %29 : vector<1x256xi1> to vector<1x256xi1>
    %35 = vector.broadcast %34 : vector<1x256xi1> to vector<4x256xi1>
    %36 = vector.broadcast %cst_12 : f32 to vector<4x256xf32>
    %37 = arith.select %35, %33, %36 : vector<4x256xi1>, vector<4x256xf32>
    %c240_i32_13 = arith.constant 240 : i32
    %38 = tpu.dynamic_rotate %10 by %c240_i32_13 dim 1 : vector<4x256xf32>, i32 -> vector<4x256xf32>
    %cst_14 = arith.constant 0.000000e+00 : f32
    %39 = vector.shape_cast %31 : vector<1x256xi1> to vector<1x256xi1>
    %40 = vector.broadcast %39 : vector<1x256xi1> to vector<4x256xi1>
    %41 = vector.broadcast %cst_14 : f32 to vector<4x256xf32>
    %42 = arith.select %40, %38, %41 : vector<4x256xi1>, vector<4x256xf32>
    %c239_i32 = arith.constant 239 : i32
    %43 = tpu.dynamic_rotate %10 by %c239_i32 dim 1 : vector<4x256xf32>, i32 -> vector<4x256xf32>
    %cst_15 = arith.constant 0.000000e+00 : f32
    %44 = vector.shape_cast %32 : vector<1x256xi1> to vector<1x256xi1>
    %45 = vector.broadcast %44 : vector<1x256xi1> to vector<4x256xi1>
    %46 = vector.broadcast %cst_15 : f32 to vector<4x256xf32>
    %47 = arith.select %45, %43, %46 : vector<4x256xi1>, vector<4x256xf32>
    %c0_16 = arith.constant 0 : index
    %c0_17 = arith.constant 0 : index
    %c0_18 = arith.constant 0 : index
    %48 = vector.load %arg3[%c0_16, %c0_17, %c0_18] : memref<4x16x4xf32, #tpu.memory_space<vmem>>, vector<1x16x4xf32>
    %49 = vector.shape_cast %48 : vector<1x16x4xf32> to vector<16x4xf32>
    %cst_19 = arith.constant dense<0.000000e+00> : vector<16x256xf32>
    %50 = tpu.matmul %49, %10, %cst_19 {dimension_numbers = #tpu.dot_dimension_numbers<[1], [0], [0], [1], [0, 0, 1, 1], [], []>} : vector<16x4xf32>, vector<4x256xf32>, vector<16x256xf32> -> vector<16x256xf32>
    %c1 = arith.constant 1 : index
    %c0_20 = arith.constant 0 : index
    %c0_21 = arith.constant 0 : index
    %51 = vector.load %arg3[%c1, %c0_20, %c0_21] : memref<4x16x4xf32, #tpu.memory_space<vmem>>, vector<1x16x4xf32>
    %52 = vector.shape_cast %51 : vector<1x16x4xf32> to vector<16x4xf32>
    %cst_22 = arith.constant dense<0.000000e+00> : vector<16x256xf32>
    %53 = tpu.matmul %52, %37, %cst_22 {dimension_numbers = #tpu.dot_dimension_numbers<[1], [0], [0], [1], [0, 0, 1, 1], [], []>} : vector<16x4xf32>, vector<4x256xf32>, vector<16x256xf32> -> vector<16x256xf32>
    %54 = arith.addf %50, %53 : vector<16x256xf32>
    %c2 = arith.constant 2 : index
    %c0_23 = arith.constant 0 : index
    %c0_24 = arith.constant 0 : index
    %55 = vector.load %arg3[%c2, %c0_23, %c0_24] : memref<4x16x4xf32, #tpu.memory_space<vmem>>, vector<1x16x4xf32>
    %56 = vector.shape_cast %55 : vector<1x16x4xf32> to vector<16x4xf32>
    %cst_25 = arith.constant dense<0.000000e+00> : vector<16x256xf32>
    %57 = tpu.matmul %56, %42, %cst_25 {dimension_numbers = #tpu.dot_dimension_numbers<[1], [0], [0], [1], [0, 0, 1, 1], [], []>} : vector<16x4xf32>, vector<4x256xf32>, vector<16x256xf32> -> vector<16x256xf32>
    %58 = arith.addf %54, %57 : vector<16x256xf32>
    %c3 = arith.constant 3 : index
    %c0_26 = arith.constant 0 : index
    %c0_27 = arith.constant 0 : index
    %59 = vector.load %arg3[%c3, %c0_26, %c0_27] : memref<4x16x4xf32, #tpu.memory_space<vmem>>, vector<1x16x4xf32>
    %60 = vector.shape_cast %59 : vector<1x16x4xf32> to vector<16x4xf32>
    %cst_28 = arith.constant dense<0.000000e+00> : vector<16x256xf32>
    %61 = tpu.matmul %60, %47, %cst_28 {dimension_numbers = #tpu.dot_dimension_numbers<[1], [0], [0], [1], [0, 0, 1, 1], [], []>} : vector<16x4xf32>, vector<4x256xf32>, vector<16x256xf32> -> vector<16x256xf32>
    %62 = arith.addf %58, %61 : vector<16x256xf32>
    %63 = vector.broadcast %1 : vector<16x1xf32> to vector<16x256xf32>
    %64 = arith.addf %62, %63 : vector<16x256xf32>
    %cst_29 = arith.constant 0.000000e+00 : f32
    %65 = vector.broadcast %cst_29 : f32 to vector<16x256xf32>
    %66 = arith.maximumf %64, %65 : vector<16x256xf32>
    %c0_30 = arith.constant 0 : index
    %c0_31 = arith.constant 0 : index
    %67 = vector.load %arg4[%c0_30, %c0_31] : memref<32x16xf32, #tpu.memory_space<vmem>>, vector<32x16xf32>
    %cst_32 = arith.constant dense<0.000000e+00> : vector<32x256xf32>
    %68 = tpu.matmul %67, %66, %cst_32 {dimension_numbers = #tpu.dot_dimension_numbers<[1], [0], [0], [1], [0, 0, 1, 1], [], []>} : vector<32x16xf32>, vector<16x256xf32>, vector<32x256xf32> -> vector<32x256xf32>
    %69 = vector.broadcast %2 : vector<32x1xf32> to vector<32x256xf32>
    %70 = arith.addf %68, %69 : vector<32x256xf32>
    %cst_33 = arith.constant 0.000000e+00 : f32
    %71 = vector.broadcast %cst_33 : f32 to vector<32x256xf32>
    %72 = arith.maximumf %70, %71 : vector<32x256xf32>
    %c0_34 = arith.constant 0 : index
    %c0_35 = arith.constant 0 : index
    %c0_36 = arith.constant 0 : index
    %73 = vector.load %arg6[%c0_34, %c0_35, %c0_36] : memref<1x32x256xf32, #tpu.memory_space<vmem>>, vector<1x32x256xf32>
    %74 = vector.shape_cast %73 : vector<1x32x256xf32> to vector<32x256xf32>
    %75 = vector.shape_cast %72 : vector<32x256xf32> to vector<1x32x256xf32>
    tpu.vector_store %arg6[%c0_34, %c0_35, %c0_36], %75 {strides = array<i32>} : memref<1x32x256xf32, #tpu.memory_space<vmem>>, vector<1x32x256xf32>,
    return
  }
  func.func @transform_0(%arg0: i32) -> (i32, i32, i32) {
    %c0_i32 = arith.constant 0 : i32
    %c0_i32_0 = arith.constant 0 : i32
    %c0_i32_1 = arith.constant 0 : i32
    return %arg0, %c0_i32, %c0_i32_0 : i32, i32, i32
  }
  func.func @transform_1(%arg0: i32) -> (i32, i32) {
    %c0_i32 = arith.constant 0 : i32
    %c0_i32_0 = arith.constant 0 : i32
    %c0_i32_1 = arith.constant 0 : i32
    return %c0_i32, %c0_i32_0 : i32, i32
  }
  func.func @transform_2(%arg0: i32) -> (i32, i32, i32) {
    %c0_i32 = arith.constant 0 : i32
    %c0_i32_0 = arith.constant 0 : i32
    %c0_i32_1 = arith.constant 0 : i32
    %c0_i32_2 = arith.constant 0 : i32
    return %c0_i32, %c0_i32_0, %c0_i32_1 : i32, i32, i32
  }
  func.func @transform_3(%arg0: i32) -> (i32, i32) {
    %c0_i32 = arith.constant 0 : i32
    %c0_i32_0 = arith.constant 0 : i32
    %c0_i32_1 = arith.constant 0 : i32
    return %c0_i32, %c0_i32_0 : i32, i32
  }
  func.func @transform_4(%arg0: i32) -> (i32, i32) {
    %c0_i32 = arith.constant 0 : i32
    %c0_i32_0 = arith.constant 0 : i32
    %c0_i32_1 = arith.constant 0 : i32
    return %c0_i32, %c0_i32_0 : i32, i32
  }
  func.func @transform_5(%arg0: i32) -> (i32, i32, i32) {
    %c0_i32 = arith.constant 0 : i32
    %c0_i32_0 = arith.constant 0 : i32
    %c0_i32_1 = arith.constant 0 : i32
    return %arg0, %c0_i32, %c0_i32_0 : i32, i32, i32
  }
}

</mosaic_0001>

<bundles_post_ra>
// kernel: tpu_custom_call.1
= control target key start
LH: loop header
LB: loop body
LE: loop exit
PB: predicated region body
PF: predicated region fallthrough
CT: control target
= control target key end

     0   :  { %10 = vsyncpa [#allocation3], 0  ;;  %s1450_s0 = inlined_call_operand.vmem [shape: f32[2,16,256], index: 0, kind: input, shape index: {}]   ;;  %s1451_s1 = inlined_call_operand.vmem [shape: f32[4,16], index: 1, kind: input, shape index: {}]   ;;  %s1452_s2 = inlined_call_operand.vmem [shape: f32[4,16,4], index: 2, kind: input, shape index: {}]   ;;  %s1453_s3 = inlined_call_operand.vmem [shape: f32[32,16], index: 3, kind: input, shape index: {}]   ;;  %s1454_s4 = inlined_call_operand.vmem [shape: f32[56,1], index: 4, kind: input, shape index: {}]   ;;  %s1455_s5 = inlined_call_operand.hbm [shape: f32[2,32,256], index: 5, kind: output, shape index: {}]  }
   0x1   :  { %12 = vsyncpa [#allocation3 + $0x1], 0  ;;  %s1214_s18 = smov 0   ;;  %s1216_s19 = smov 0  }
   0x2   :  { %s1218_s20 = smov 0   ;;  %s1220_s21 = smov 0  }
   0x3 LB: > { %s1235_s22 = sadd.s32 4294967295, %s1174_s21   ;;  %s1001_s23 = sadd.s32 4294967294, %s1174_s21   ;;  %s1174_s21 = sphi %s1220_s21, %s1465_s21   ;;  %s1170_s20 = sphi %s1218_s20, %s1464_s20   ;;  %s1166_s19 = sphi %s1216_s19, %s1463_s19   ;;  %s1162_s18 = sphi %s1214_s18, %s1462_s18  }
   0x4   : > { %s1239_s24 = sadd.s32 1, %s1174_s21   ;;  %s135_s25 = sadd.s32 1, %s1170_s20 }
   0x5   : > { %s132_s26 = ssub.s32 %s1174_s21, %s1239_s24  ;;  %p145_p0 = scmp.ne.s32.totalorder %s1170_s20, %s1166_s19 }
   0x6   : > { %p133_p1 = scmp.eq.s32.totalorder %s132_s26, 0  ;;  %p146_p2 = scmp.eq.s32.totalorder %s1235_s22, 1 }
   0x7   : > { %p151_p3 = scmp.ne.s32.totalorder %s1166_s19, %s1162_s18  ;;  %p152_p4 = scmp.eq.s32.totalorder %s1001_s23, 1 }
   0x8   : > { %s1250_s27 = scalar_select %p133_p1, %s1170_s20, %s135_s25  }
   0x9   : > { %p1252_p5 = por %p146_p2, %p145_p0  ;;  %p1256_p6 = por %p152_p4, %p151_p3 }
   0xa   : > { %p1004_p7 = scmp.ge.s32.totalorder %s1174_s21, 1  ;;  %p190_p8 = scmp.lt.s32.totalorder %s1174_s21, 3 }
   0xc   : > { %p191_p9 = pnand %p1004_p7, %p190_p8 }
   0xd   : > { %p218_p10 = scmp.lt.s32.totalorder (!%p191_p9), %s1235_s22, 1  ;;  %v1176_v0 = vmov (!%p191_p9), 0.0   ;;  %v1177_v1 = vmov (!%p191_p9), 0   ;;  %v223_v2 = vld [vmem:[%s1454_s4] sm:$0xf] (!%p191_p9)  ;;  %vm240_vm0 = vcmask (!%p191_p9), 130048   ;;  %v317_v23 = vlaneseq (!%p191_p9) }
   0xe   : > { %194 = sbr.rel (%p191_p9) target bundleno = 859 (0x35b), region = 40  ;;  %308 = vmatprep.mubr.f32.mxu0 (!%p191_p9), %v1176_v0  ;;  %1110 = vset.pattern.permute.xlu0 (!%p191_p9), %v1177_v1  ;;  %v234_v9 = vld [vmem:[%s1451_s1] sm:$0xf] (!%p191_p9)  ;;  %s1178_s14 = smov (!%p191_p9), 127   ;;  %v225_v17 = vld [vmem:[%s1454_s4 + $0x10] sm:$0xff] (!%p191_p9)  ;;  %v224_v20 = vld [vmem:[%s1454_s4 + $0x8] sm:$0xff] (!%p191_p9) }
   0xf   : > { %237 = vperm.xlu0 (!%p191_p9), %1110, %v223_v2   ;;  %478 = vmatprep.mubr.f32.mxu1 (!%p191_p9), %v1176_v0  ;;  %s1179_s15 = smov (!%p191_p9), 112   ;;  %s1180_s16 = smov (!%p191_p9), 111   ;;  %v227_v18 = vld [vmem:[%s1454_s4 + $0x20] sm:$0xff] (!%p191_p9)  ;;  %v229_v19 = vld [vmem:[%s1454_s4 + $0x30] sm:$0xff] (!%p191_p9)  ;;  %v226_v21 = vld [vmem:[%s1454_s4 + $0x18] sm:$0xff] (!%p191_p9)  ;;  %v318_v24 = vand.u32 (!%p191_p9), 127, %v317_v23 }
  0x10   : > { %1111 = vset.pattern.permute.xlu1 (!%p191_p9), %v1177_v1  ;;  %v228_v22 = vld [vmem:[%s1454_s4 + $0x28] sm:$0xff] (!%p191_p9)  ;;  %vm401_vm4 = vcmask (!%p191_p9), 1043456   ;;  %v1010_v36 = vld [vmem:[%s1452_s2 + $0x18] sm:$0xff] (!%p191_p9)  ;;  %vm394_vm6 = vcmask (!%p191_p9), 31744   ;;  %v1009_v39 = vld [vmem:[%s1452_s2 + $0x10] sm:$0xff] (!%p191_p9)  ;;  %s215_s30 = sand.u32 (!%p191_p9), 1, %s1166_s19  }
  0x11   : > { %v319_v25 = vadd.s32 (!%p191_p9), 128, %v318_v24  ;;  %v324_v26 = vand.u32 (!%p191_p9), 15, %v318_v24  ;;  %vm354_vm1 = vcmp.lt.s32.totalorder (!%p191_p9), %v318_v24, 127  ;;  %vm367_vm5 = vcmp.lt.s32.totalorder (!%p191_p9), %v318_v24, 112  ;;  %v389_v42 = vld [vmem:[%s1452_s2] sm:$0xff] (!%p191_p9)  ;;  %v390_v48 = vld [vmem:[%s1452_s2 + $0x8] sm:$0xff] (!%p191_p9) }
  0x12   : > { %vm380_vm8 = vcmp.lt.s32.totalorder (!%p191_p9), %v318_v24, 111  ;;  %v1019_v50 = vld [vmem:[%s1452_s2 + $0x20] sm:$0xff] (!%p191_p9)  ;;  %v1020_v52 = vld [vmem:[%s1452_s2 + $0x28] sm:$0xff] (!%p191_p9)  ;;  %v1025_v53 = vld [vmem:[%s1452_s2 + $0x30] sm:$0xff] (!%p191_p9)  ;;  %s1005_s6 = sshll.u32 (!%p191_p9), %s215_s30, 6 }
  0x13   : > { %v331_v27 = vand.u32 (!%p191_p9), 15, %v319_v25  ;;  %vm1295_vm2 = vcmp.ne.s32.totalorder (!%p191_p9), %v324_v26, 15  ;;  %vm347_vm7 = vcmp.lt.s32.totalorder (!%p191_p9), %v319_v25, 240  ;;  %v1026_v54 = vld [vmem:[%s1452_s2 + $0x38] sm:$0xff] (!%p191_p9) }
  0x15   : > { %s219_s7 = scalar_select %p218_p10, %s1235_s22, 1  ;;  %vm1299_vm3 = vcmp.ne.s32.totalorder %v331_v27, 15 }
  0x16   : > { %vm349_vm9 = vmand %vm1299_vm3, %vm347_vm7 }
  0x17   : > { %s1040_s8 = sshll.u32 %s219_s7, 5  ;;  %s1388_s7 = scalar_lea.vmem [#allocation2], %s1005_s6 }
  0x18   : > { %s222_s11 = scalar_lea.vmem %s1450_s0, %s1040_s8  ;;  %s1041_s8 = sshll.u32 %s1235_s22, 10 }
  0x19   : > { %v231_v3 = vld [vmem:[%s222_s11 + $0x8] sm:$0xff]  ;;  %v233_v4 = vld [vmem:[%s222_s11 + $0x18] sm:$0xff]  ;;  %v230_v5 = vld [vmem:[%s222_s11] sm:$0xff]  ;;  %s939_s9 = sshll.u32 %s1388_s7, 4  ;;  %s1401_s12 = scalar_lea.hbm %s1455_s5, %s1041_s8  ;;  %s1403_s9 = int_to_ptr.vmem [resolvable:$true] %s939_s9 }
  0x1a   : > { %v1042_v6 = vpack.c.bf16 %v233_v4, %v231_v3  ;;  %v232_v7 = vld [vmem:[%s222_s11 + $0x10] sm:$0xff]  ;;  %s1409_s22 = scalar_lea.sflag [#allocation3], %s215_s30  ;;  %s1112_s13 = scalar_lea.vmem %s1403_s9, 1024 }
  0x1b   : > { %v1044_v8 = vpack.c.bf16 %v232_v7, %v230_v5  ;;  %p1113_p11 = scmp.ne.s32.totalorder %s1403_s9, %s1112_s13 }
  0x1c   : > { %1043 = vmatprep.subr.bf16.mxu0 %v1042_v6 }
  0x1d   : > { %1045 = vmatpush1.bf16.msra.mxu0 %v1044_v8  ;;  %p1114_p12 = pnand %p1113_p11, %p1252_p5 }
  0x1f   : > { %p1115_p13 = pneg %p1114_p12 }
  0x20   : > { %1008 = vmatmul.mubr.msk.f32.vlgmr.msra.gmra.mrb[0].mxu0 %vm240_vm0, %v234_v9 }
  0x21   : > { %472 = vmatprep.mubr.f32.mxu0 %v1176_v0 }
  0x8e   : > { %v238_v10 = vpop.permute.xlu0 %237 }
  0xf3   : > { %v310_v11 = vpop.f32.mrb[0].mxu0 }
  0xf4   : > { %v311_v12 = vadd.f32 %v310_v11, %v238_v10  ;;  %v312_v13 = vpop.f32.mrb[1].mxu0 }
  0xf5   : > { %v313_v14 = vadd.f32 %v312_v13, %v238_v10  ;;  %v785_v13 = vld [vmem:[%s1453_s3 + $0x8] sm:$0xff] }
  0xf6   : > { %v315_v15 = vmax.f32 %v311_v12, 0.0  ;;  %v784_v12 = vld [vmem:[%s1453_s3] sm:$0xff] }
  0xf7   : > { %v316_v16 = vmax.f32 %v313_v14, 0.0  ;;  %v786_v14 = vld [vmem:[%s1453_s3 + $0x10] sm:$0xff] }
  0xf8   : > { %350 = vrot.lane.b32.xlu0 %v315_v15, %s1178_s14 }
  0xf9   : > { %352 = vrot.lane.b32.xlu1 %v316_v16, %s1178_s14  ;;  %s1181_s14 = smov [#allocation2]  }
  0xfc   : > { %365 = vrot.lane.b32.xlu0 %v316_v16, %s1179_s15 }
  0xfd   : > { %363 = vrot.lane.b32.xlu1 %v315_v15, %s1179_s15  ;;  %s1116_s15 = sshll.u32 %s1181_s14, 4  ;;  %s1117_s15 = int_to_ptr.vmem [resolvable:$false] %s1116_s15 }
  0xfe   : > { %p1119_p0 = scmp.lt.s32.totalorder %s1403_s9, %s1117_s15 }
 0x100   : > { %378 = vrot.lane.b32.xlu0 %v316_v16, %s1180_s16 }
 0x101   : > { %376 = vrot.lane.b32.xlu1 %v315_v15, %s1180_s16  ;;  %s1118_s16 = scalar_lea.vmem %s1117_s15, 2048 }
 0x102   : > { %p1120_p1 = scmp.lt.s32.totalorder %s1118_s16, %s1112_s13 }
 0x104   : > { %773 = vperm.xlu0 %1110, %v225_v17   ;;  %p1121_p2 = por %p1120_p1, %p1119_p0 }
 0x105   : > { %768 = vperm.xlu1 %1111, %v224_v20  }
 0x106   : > { %p1122_p3 = pnand %p1121_p2, %p1115_p13 }
 0x108   : > { %795 = vperm.xlu0 %1110, %v227_v18  }
 0x109   : > { %790 = vperm.xlu1 %1111, %v226_v21  }
 0x10c   : > { %805 = vperm.xlu0 %1110, %v229_v19  }
 0x10d   : > { %800 = vperm.xlu1 %1111, %v228_v22  }
 0x16a   : > { %v351_v28 = vpop.permute.xlu0 %350 }
 0x16b   : > { %v353_v31 = vpop.permute.xlu1 %352 }
 0x16c   : > { %v355_v32 = vsel %vm354_vm1, %v351_v28, %v353_v31  ;;  %v356_v33 = vsel %vm354_vm1, %v353_v31, %v351_v28 }
 0x16d   : > { %v361_v34 = vsel %vm1295_vm2, %v355_v32, 0.0  ;;  %v362_v35 = vsel %vm1299_vm3, %v356_v33, 0.0 }
 0x16e   : > { %1011 = vmatprep.subr.msk.mxu0 %vm401_vm4, %v362_v35  ;;  %1050 = vmatprep.subr.msk.mxu1 %vm401_vm4, %v362_v35  ;;  %v366_v37 = vpop.permute.xlu0 %365 }
 0x16f   : > { %v364_v38 = vpop.permute.xlu1 %363  ;;  %1012 = vmatpush1.msk.msra.mxu0 %vm401_vm4, %v361_v34  ;;  %1051 = vmatpush1.msk.msra.mxu1 %vm401_vm4, %v361_v34 }
 0x170   : > { %v369_v40 = vsel %vm367_vm5, %v366_v37, %v364_v38  ;;  %1014 = vmatmul.mubr.msk.f32.vlgmr.msra.gmra.mrb[0].mxu1 %vm394_vm6, %v1010_v36  ;;  %1015 = vmatprep.subr.msk.mxu1 %vm401_vm4, %v316_v16  ;;  %v368_v45 = vsel %vm367_vm5, %v364_v38, %v366_v37 }
 0x171   : > { %v375_v41 = vsel %vm347_vm7, %v369_v40, 0.0  ;;  %1016 = vmatpush1.msk.msra.mxu1 %vm401_vm4, %v315_v15  ;;  %561 = vmatprep.mubr.f32.mxu1 %v1176_v0  ;;  %v787_v15 = vld [vmem:[%s1453_s3 + $0x18] sm:$0xff] }
 0x172   : > { %1021 = vmatprep.subr.msk.mxu1 %vm401_vm4, %v375_v41  ;;  %v379_v43 = vpop.permute.xlu0 %378  ;;  %1013 = vmatmul.mubr.msk.f32.vlgmr.msra.gmra.mrb[2].mxu0 %vm394_vm6, %v1009_v39 }
 0x173   : > { %v377_v44 = vpop.permute.xlu1 %376  ;;  %884 = vmatprep.mubr.f32.mxu0 %v1176_v0 }
 0x174   : > { %v382_v46 = vsel %vm380_vm8, %v379_v43, %v377_v44  ;;  %1017 = vmatmul.mubr.msk.f32.vlgmr.msra.gmra.mrb[2].mxu1 %vm394_vm6, %v389_v42  ;;  %v381_v49 = vsel %vm380_vm8, %v377_v44, %v379_v43 }
 0x175   : > { %v388_v47 = vsel %vm349_vm9, %v382_v46, 0.0  ;;  %1022 = vmatpush1.msk.msra.mxu1 %vm401_vm4, %v368_v45  ;;  %567 = vmatprep.mubr.f32.mxu1 %v1176_v0  ;;  %v387_v51 = vsel %vm1295_vm2, %v381_v49, 0.0 }
 0x176   : > { %1027 = vmatprep.subr.msk.mxu1 %vm401_vm4, %v388_v47 }
 0x178   : > { %1018 = vmatmul.mubr.msk.f32.gmra.mrb[0].mxu1 %vm394_vm6, %v390_v48 }
 0x179   : > { %653 = vmatprep.mubr.f32.mxu1 %v1176_v0 }
 0x17c   : > { %1023 = vmatmul.mubr.msk.f32.vlgmr.msra.gmra.mrb[2].mxu1 %vm394_vm6, %v1019_v50 }
 0x17d   : > { %1028 = vmatpush1.msk.msra.mxu1 %vm401_vm4, %v387_v51  ;;  %659 = vmatprep.mubr.f32.mxu1 %v1176_v0 }
 0x180   : > { %1024 = vmatmul.mubr.msk.f32.gmra.mrb[0].mxu1 %vm394_vm6, %v1020_v52 }
 0x181   : > { %749 = vmatprep.mubr.f32.mxu1 %v1176_v0 }
 0x183   : > { %v774_v63 = vpop.permute.xlu0 %773 }
 0x184   : > { %1029 = vmatmul.mubr.msk.f32.vlgmr.msra.gmra.mrb[2].mxu1 %vm394_vm6, %v1025_v53  ;;  %v769_v60 = vpop.permute.xlu1 %768 }
 0x185   : > { %755 = vmatprep.mubr.f32.mxu1 %v1176_v0 }
 0x187   : > { %v796_v22 = vpop.permute.xlu0 %795 }
 0x188   : > { %1030 = vmatmul.mubr.msk.f32.gmra.mrb[0].mxu1 %vm394_vm6, %v1026_v54  ;;  %v791_v16 = vpop.permute.xlu1 %790 }
 0x18b   : > { %v806_v35 = vpop.permute.xlu0 %805 }
 0x18c   : > { %v801_v28 = vpop.permute.xlu1 %800 }
 0x245   : > { %v474_v55 = vpop.f32.mrb[2].mxu0 }
 0x246   : > { %v476_v56 = vpop.f32.mrb[3].mxu0 }
 0x257   : > { %v751_v57 = vpop.f32.mrb[2].mxu1 }
 0x258   : > { %v1052_v58 = vadd.f32 %v751_v57, %v474_v55  ;;  %v753_v59 = vpop.f32.mrb[3].mxu1 }
 0x259   : > { %v1053_v61 = vadd.f32 %v753_v59, %v476_v56 }
 0x25a   : > { %v776_v62 = vadd.f32 %v1052_v58, %v769_v60 }
 0x25b   : > { %v777_v1 = vadd.f32 %v1053_v61, %v769_v60  ;;  %v757_v2 = vpop.f32.mrb[0].mxu1 }
 0x25c   : > { %v778_v3 = vadd.f32 %v774_v63, %v757_v2  ;;  %v759_v4 = vpop.f32.mrb[1].mxu1  ;;  %v780_v6 = vmax.f32 %v776_v62, 0.0 }
 0x25d   : > { %v779_v5 = vadd.f32 %v774_v63, %v759_v4  ;;  %v781_v8 = vmax.f32 %v777_v1, 0.0 }
 0x25e   : > { %v782_v7 = vmax.f32 %v778_v3, 0.0 }
 0x25f   : > { %v783_v9 = vmax.f32 %v779_v5, 0.0 }
 0x260   : > { %v1048_v10 = vpack.c.bf16 %v782_v7, %v780_v6 }
 0x261   : > { %v1046_v11 = vpack.c.bf16 %v783_v9, %v781_v8 }
 0x263   : > { %1047 = vmatprep.subr.bf16.mxu0 %v1046_v11 }
 0x264   : > { %1049 = vmatpush1.bf16.msra.mxu0 %v1048_v10 }
 0x267   : > { %1031 = vmatmul.mubr.msk.f32.vlgmr.msra.gmra.mrb[4].mxu0 %vm240_vm0, %v784_v12 }
 0x268   : > { %890 = vmatprep.mubr.f32.mxu0 %v1176_v0 }
 0x26b   : > { %1032 = vmatmul.mubr.msk.f32.gmra.mrb[6].mxu0 %vm240_vm0, %v785_v13 }
 0x26c   : > { %896 = vmatprep.mubr.f32.mxu0 %v1176_v0 }
 0x26f   : > { %1033 = vmatmul.mubr.msk.f32.gmra.mrb[8].mxu0 %vm240_vm0, %v786_v14 }
 0x270   : > { %902 = vmatprep.mubr.f32.mxu0 %v1176_v0 }
 0x273   : > { %1034 = vmatmul.mubr.msk.f32.gmra.mrb[10].mxu0 %vm240_vm0, %v787_v15 }
 0x33a   : > { %v886_v17 = vpop.f32.mrb[4].mxu0 }
 0x33b   : > { %v887_v18 = vadd.f32 %v886_v17, %v791_v16  ;;  %v888_v19 = vpop.f32.mrb[5].mxu0 }
 0x33c   : > { %v889_v20 = vadd.f32 %v888_v19, %v791_v16 }
 0x33d   : > { %v909_v21 = vmax.f32 %v887_v18, 0.0 }
 0x33e   : > { %v910_v23 = vmax.f32 %v889_v20, 0.0  ;;  %v892_v24 = vpop.f32.mrb[6].mxu0 }
 0x33f   : > { %917 = vst [vmem:[%s1388_s7] sm:$0xff] %v909_v21  ;;  %v893_v0 = vadd.f32 %v892_v24, %v796_v22  ;;  %v894_v25 = vpop.f32.mrb[7].mxu0 }
 0x340   : > { %918 = vst [vmem:[%s1388_s7 + $0x8] sm:$0xff] %v910_v23  ;;  %v895_v26 = vadd.f32 %v894_v25, %v796_v22 }
 0x341   : > { %v911_v27 = vmax.f32 %v893_v0, 0.0 }
 0x342   : > { %v912_v29 = vmax.f32 %v895_v26, 0.0  ;;  %v898_v30 = vpop.f32.mrb[8].mxu0 }
 0x343   : > { %919 = vst [vmem:[%s1388_s7 + $0x10] sm:$0xff] %v911_v27  ;;  %v899_v31 = vadd.f32 %v898_v30, %v801_v28  ;;  %v900_v32 = vpop.f32.mrb[9].mxu0 }
 0x344   : > { %920 = vst [vmem:[%s1388_s7 + $0x18] sm:$0xff] %v912_v29  ;;  %v901_v33 = vadd.f32 %v900_v32, %v801_v28 }
 0x345   : > { %v913_v34 = vmax.f32 %v899_v31, 0.0 }
 0x346   : > { %v914_v36 = vmax.f32 %v901_v33, 0.0  ;;  %v904_v37 = vpop.f32.mrb[10].mxu0 }
 0x347   : > { %921 = vst [vmem:[%s1388_s7 + $0x20] sm:$0xff] %v913_v34  ;;  %v905_v38 = vadd.f32 %v904_v37, %v806_v35  ;;  %v906_v39 = vpop.f32.mrb[11].mxu0 }
 0x348   : > { %922 = vst [vmem:[%s1388_s7 + $0x28] sm:$0xff] %v914_v36  ;;  %v907_v40 = vadd.f32 %v906_v39, %v806_v35 }
 0x349   : > { %v915_v41 = vmax.f32 %v905_v38, 0.0 }
 0x34a   : > { %v916_v42 = vmax.f32 %v907_v40, 0.0 }
 0x34b   : > { %923 = vst [vmem:[%s1388_s7 + $0x30] sm:$0xff] %v915_v41 }
 0x34c   : > { %924 = vst [vmem:[%s1388_s7 + $0x38] sm:$0xff] %v916_v42 }
 0x34d   : > { %1125 = shalt.err (!%p1122_p3)
}
 0x34e   : > { %s1126_s17 = scalar_lea.hbm %s1401_s12, 1024  ;;  %s1130_s26 = scalar_lea.hbm %s1455_s5, 2048 }
 0x34f   : > { %p1127_p4 = scmp.ne.s32.totalorder %s1401_s12, %s1126_s17  ;;  %p1131_p9 = scmp.lt.u32.totalorder %s1401_s12, %s1455_s5 }
 0x350   : > { %p1132_p10 = scmp.lt.u32.totalorder %s1130_s26, %s1126_s17  ;;  %p1134_p12 = scmp.lt.u32.totalorder %s1126_s17, %s1401_s12 }
 0x351   : > { %p1128_p7 = pnand %p1127_p4, %p1252_p5 }
 0x352   : > { %p1133_p11 = por %p1132_p10, %p1131_p9 }
 0x353   : > { %p1129_p8 = pneg %p1128_p7 }
 0x354   : > { %p1135_p13 = por %p1134_p12, %p1133_p11 }
 0x356   : > { %p1136_p0 = pnand %p1135_p13, %p1129_p8 }
 0x358   : > { %1139 = shalt.err (!%p1136_p0)
}
 0x359   : > { %s1182_s7 = smov 256   ;;  %s1183_s8 = smov 16  }
 0x35a   : > { %1064 = dma.vmem_to_hbm [thread:$0]  (%p1252_p5), %s1403_s9, 1024, %s1401_s12, %s1409_s22, %s1182_s7, %s1182_s7, %s1183_s8  }
 0x35b PF: > { %p1070_p1 = scmp.ge.s32.totalorder %s1174_s21, 2  ;;  %s954_s10 = sand.u32 1, %s1162_s18  }
 0x35c   : > { %s955_s11 = scalar_lea.sflag [#allocation3], %s954_s10 }
 0x35d   : > { %p1067_p2 = pnand %p1070_p1, %p1256_p6 }
 0x35f   : > { %1157 = dma.done.wait (!%p1067_p2), %s955_s11, 1024  }
 0x360   : > { %1159 = vsyncadd (!%p1067_p2), %s955_s11, 4294966272  ;;  %p15_p3 = scmp.ge.s32.totalorder %s1239_s24, 4   ;;  %s1462_s18 = smov %s1166_s19 }
 0x361   : > { %s1463_s19 = smov %s1170_s20  ;;  %s1464_s20 = smov %s1250_s27 }
 0x362   : > { %s1465_s21 = smov %s1239_s24  ;;  %17 = sbr.rel (!%p15_p3) target bundleno = 3 (0x3), region = 78 }
 0x369   :  { %960 = vsyncpa [#allocation3], 1 }
 0x36a   :  { %962 = vsyncpa [#allocation3 + $0x1], 1 }

</bundles_post_ra>
